<compile_context>
chip_gen: v5e
topology: v5e:2x2
jax: 0.10.0
libtpu: 0.0.40
codegen_flags: <defaults>
</compile_context>

<pallas_src>
import functools

import numpy as np
import jax
import jax.numpy as jnp
from jax.experimental import pallas as pl
from jax.experimental.pallas import tpu as pltpu


# -----------------------------------------------------------------------------
# Kernel: one batch-tile of the fused ApproxRepSet forward pass.
# -----------------------------------------------------------------------------
def _repset_kernel(x_ref, wc_ref, w1_ref, b1_ref, w2_ref, b2_ref, o_ref, *,
                   n_hidden_sets, n_elements):
    """x_ref : (TB, N, d)   batch tile of input sets (VMEM, bf16 or f32)
       wc_ref: (d, H*E)     Wc (VMEM, same dtype as x)
       w1_ref: (H, 32)      fc1 weight, stored (in, out) (VMEM, f32)
       b1_ref: (1, 32)      fc1 bias (VMEM, f32)
       w2_ref: (32, C)      fc2 weight, stored (in, out) (VMEM, f32)
       b2_ref: (1, C)       fc2 bias (VMEM, f32)
       o_ref : (TB, C)      log-softmax output (VMEM, f32)
    """
    TB, N, d = x_ref.shape
    H, E = n_hidden_sets, n_elements

    # ---- t = relu(X @ Wc): MXU matmul, f32 accumulator ------------------------
    x = x_ref[...].reshape(TB * N, d)
    t = jnp.dot(x, wc_ref[...], preferred_element_type=jnp.float32)
    t = jnp.maximum(t, 0.0)                                  # (TB*N, H*E) f32

    # ---- max over the n_elements groups ---------------------------------------
    # PyTorch: t.view(B, N, E, H).max(dim=2) => column k = e*H + h, max over e.
    # Roll-fold: the maxima stay 128-lane dense on the VPU, the shifts run on
    # the XLU (slack slot), and only ONE narrow [:, :H] slice remains.
    if E & (E - 1) == 0:                     # power of two: log2(E) folds
        m = t
        shift = H
        while shift < H * E:
            m = jnp.maximum(m, pltpu.roll(m, shift=shift, axis=1))
            shift *= 2
    else:                                    # general E: E-1 rolls of t
        m = t
        for e in range(1, E):
            m = jnp.maximum(m, pltpu.roll(t, shift=e * H, axis=1))
    m = m[:, :H]                                              # (TB*N, H)

    # ---- sum over set elements (dim N) -----------------------------------------
    s = jnp.sum(m.reshape(TB, N, H), axis=1)                  # (TB, H) f32

    # ---- fc1 + relu -------------------------------------------------------------
    h1 = jnp.dot(s, w1_ref[...], preferred_element_type=jnp.float32) + b1_ref[...]
    h1 = jnp.maximum(h1, 0.0)                                 # (TB, 32)

    # ---- fc2 + log_softmax -------------------------------------------------------
    logits = (jnp.dot(h1, w2_ref[...], preferred_element_type=jnp.float32)
              + b2_ref[...])                                  # (TB, C)
    zmax = jnp.max(logits, axis=-1, keepdims=True)
    z = logits - zmax
    lse = jnp.log(jnp.sum(jnp.exp(z), axis=-1, keepdims=True))
    o_ref[...] = (z - lse).astype(o_ref.dtype)


# -----------------------------------------------------------------------------
# Tiling policy
# -----------------------------------------------------------------------------
def _round_up(x, m):
    return ((x + m - 1) // m) * m


def _choose_batch_tile(B, block_b):
    """Effective batch tile: multiple of 8 (legal output sublane dim), >= 2
    grid steps when the batch is big enough (v7x megacore), exact tile for
    tiny batches."""
    block_b = max(8, (block_b // 8) * 8)
    if B > block_b:
        return block_b
    if B >= 16:
        return _round_up(pl.cdiv(B, 2), 8)     # split so both TCs get work
    return B                                    # tiny batch: single exact tile


# -----------------------------------------------------------------------------
# Wrapper
# -----------------------------------------------------------------------------
def approx_repset_forward(params, X, *, n_hidden_sets, n_elements,
                          block_b=512, compute_dtype=jnp.bfloat16,
                          x_buffers=2):
    """X: (B, N, d) -> (B, n_classes) log-probabilities (float32)."""
    Wc, w1, b1, w2, b2 = params
    B, N, d = X.shape
    HE = Wc.shape[1]
    C = w2.shape[1]
    assert HE == n_hidden_sets * n_elements

    # bf16 feed for the dominant matmul halves HBM bytes for X and hits the
    # MXU's bf16 peak on v6e/v7x; accumulation stays f32 in-kernel.  (Best
    # case: the caller already keeps X as bf16 in HBM and this cast is a no-op.)
    if X.dtype != compute_dtype:
        X = X.astype(compute_dtype)
    Wc = Wc.astype(compute_dtype)
    w1 = w1.astype(jnp.float32); b1 = b1.astype(jnp.float32)
    w2 = w2.astype(jnp.float32); b2 = b2.astype(jnp.float32)

    tb = _choose_batch_tile(B, block_b)
    grid = (pl.cdiv(B, tb),)
    # NOTE: no jnp.pad of X.  The ragged tail tile is masked by Pallas block
    # boundary handling (OOB rows are per-row independent garbage, and their
    # output rows are discarded at writeback), so X is read exactly once.

    # Generation-aware VMEM budget (raise v5e's 16 MiB scoped default for big
    # tiles, never exceed v7x's 64 MiB per-TC VMEM).
    x_bytes = tb * N * d * jnp.dtype(compute_dtype).itemsize
    t_bytes = tb * N * HE * 4
    vmem_limit = int(min(64 * 2 ** 20,
                         max(32 * 2 ** 20, 3 * x_bytes + 4 * t_bytes + (2 << 20))))

    x_spec_kwargs = {}
    if x_buffers != 2:          # optional deeper pipelining if DMA is exposed
        x_spec_kwargs["pipeline_mode"] = pl.Buffered(x_buffers)

    kern = functools.partial(_repset_kernel,
                             n_hidden_sets=n_hidden_sets,
                             n_elements=n_elements)

    out = pl.pallas_call(
        kern,
        out_shape=jax.ShapeDtypeStruct((B, C), jnp.float32),
        grid_spec=pltpu.PrefetchScalarGridSpec(
            num_scalar_prefetch=0,
            grid=grid,
            in_specs=[
                pl.BlockSpec((tb, N, d), lambda i: (i, 0, 0), **x_spec_kwargs),
                pl.BlockSpec(Wc.shape, lambda i: (0, 0)),
                pl.BlockSpec(w1.shape, lambda i: (0, 0)),
                pl.BlockSpec(b1.shape, lambda i: (0, 0)),
                pl.BlockSpec(w2.shape, lambda i: (0, 0)),
                pl.BlockSpec(b2.shape, lambda i: (0, 0)),
            ],
            out_specs=pl.BlockSpec((tb, C), lambda i: (i, 0)),
        ),
        compiler_params=pltpu.CompilerParams(
            dimension_semantics=("parallel",),     # batch tiles -> v7x megacore
            vmem_limit_bytes=vmem_limit),
    )(X, Wc, w1, b1, w2, b2)
    return out


# -----------------------------------------------------------------------------
# Parameter init (weights stored pre-transposed: layout glue hoisted to init)
# -----------------------------------------------------------------------------
def init_params(key, d, n_hidden_sets, n_elements, n_classes):
    kwc, k1w, k1b, k2w, k2b = jax.random.split(key, 5)
    # Wc ~ U(-1, 1), matching ApproxRepSet.init_weights()
    Wc = jax.random.uniform(kwc, (d, n_hidden_sets * n_elements), jnp.float32,
                            minval=-1.0, maxval=1.0)
    # fc1 / fc2: PyTorch nn.Linear default init, stored as (in, out) + (1, out)
    bound1 = 1.0 / np.sqrt(n_hidden_sets)
    w1 = jax.random.uniform(k1w, (n_hidden_sets, 32), jnp.float32,
                            minval=-bound1, maxval=bound1)
    b1 = jax.random.uniform(k1b, (1, 32), jnp.float32,
                            minval=-bound1, maxval=bound1)
    bound2 = 1.0 / np.sqrt(32)
    w2 = jax.random.uniform(k2w, (32, n_classes), jnp.float32,
                            minval=-bound2, maxval=bound2)
    b2 = jax.random.uniform(k2b, (1, n_classes), jnp.float32,
                            minval=-bound2, maxval=bound2)
    return (Wc, w1, b1, w2, b2)


# -----------------------------------------------------------------------------
# Pure-JAX reference (mirrors the PyTorch forward exactly).
# `first_matmul_dtype=bf16` reproduces the kernel's bf16 input rounding while
# keeping all arithmetic in f32, for a tight check of the bf16 path.
# -----------------------------------------------------------------------------
def approx_repset_reference(params, X, *, n_hidden_sets, n_elements,
                            first_matmul_dtype=jnp.float32):
    Wc, w1, b1, w2, b2 = params
    Xc = X.astype(first_matmul_dtype).astype(jnp.float32)
    Wcc = Wc.astype(first_matmul_dtype).astype(jnp.float32)
    t = jnp.maximum(
        jnp.einsum('bnd,dk->bnk', Xc, Wcc, precision=jax.lax.Precision.HIGHEST),
        0.0)
    B, N, _ = t.shape
    t = t.reshape(B, N, n_elements, n_hidden_sets)
    t = jnp.max(t, axis=2)
    t = jnp.sum(t, axis=1)
    t = jnp.maximum(
        jnp.dot(t, w1, precision=jax.lax.Precision.HIGHEST) + b1, 0.0)
    out = jnp.dot(t, w2, precision=jax.lax.Precision.HIGHEST) + b2
    return jax.nn.log_softmax(out, axis=1)


if __name__ == "__main__":
    # Small demo shapes consistent with the module:
    #   X: (batch=2, set_size=8, d=32); n_hidden_sets=32, n_elements=4 -> Wc has
    #   128 output columns (lane-dense first matmul); n_classes=8.
    B, N, d = 2, 8, 32
    n_hidden_sets, n_elements, n_classes = 32, 4, 8

    key = jax.random.PRNGKey(0)
    kp, kx, kx2 = jax.random.split(key, 3)
    params = init_params(kp, d, n_hidden_sets, n_elements, n_classes)
    X = jax.random.normal(kx, (B, N, d), jnp.float32)

    # 1) f32 path vs. f32 reference (tight: validates semantics vs. the spec).
    out_f32 = approx_repset_forward(params, X,
                                    n_hidden_sets=n_hidden_sets,
                                    n_elements=n_elements,
                                    compute_dtype=jnp.float32)
    out_f32 = jax.block_until_ready(out_f32)
    assert out_f32.shape == (B, n_classes), out_f32.shape
    ref_f32 = approx_repset_reference(params, X,
                                      n_hidden_sets=n_hidden_sets,
                                      n_elements=n_elements)
    np.testing.assert_allclose(np.asarray(out_f32), np.asarray(ref_f32),
                               rtol=2e-3, atol=2e-3)

    # 2) default bf16-feed path: tight vs. a bf16-feed reference, loose sanity
    #    vs. the pure-f32 spec.
    out_bf = jax.block_until_ready(
        approx_repset_forward(params, X,
                              n_hidden_sets=n_hidden_sets,
                              n_elements=n_elements))
    ref_bf = approx_repset_reference(params, X,
                                     n_hidden_sets=n_hidden_sets,
                                     n_elements=n_elements,
                                     first_matmul_dtype=jnp.bfloat16)
    np.testing.assert_allclose(np.asarray(out_bf), np.asarray(ref_bf),
                               rtol=2e-3, atol=2e-3)
    np.testing.assert_allclose(np.asarray(out_bf), np.asarray(ref_f32),
                               rtol=2e-1, atol=2e-1)

    # 3) multi-tile grid with a ragged last tile (no jnp.pad anywhere): B=101
    #    with block_b=32 -> grid=4, tail tile of 5 valid rows.
    B2 = 101
    X2 = jax.random.normal(kx2, (B2, N, d), jnp.float32)
    out2 = jax.block_until_ready(
        approx_repset_forward(params, X2,
                              n_hidden_sets=n_hidden_sets,
                              n_elements=n_elements,
                              block_b=32))
    assert out2.shape == (B2, n_classes), out2.shape
    ref2 = approx_repset_reference(params, X2,
                                   n_hidden_sets=n_hidden_sets,
                                   n_elements=n_elements,
                                   first_matmul_dtype=jnp.bfloat16)
    np.testing.assert_allclose(np.asarray(out2), np.asarray(ref2),
                               rtol=2e-3, atol=2e-3)

    print("KERNEL_OK")
</pallas_src>

<mosaic_0001>
module attributes {stable_mosaic.version = 11 : i64} {
  func.func @_repset_kernel(%arg0: i32, %arg1: memref<2x8x32xf32, #tpu.memory_space<vmem>>, %arg2: memref<32x128xf32, #tpu.memory_space<vmem>>, %arg3: memref<32x32xf32, #tpu.memory_space<vmem>>, %arg4: memref<1x32xf32, #tpu.memory_space<vmem>>, %arg5: memref<32x8xf32, #tpu.memory_space<vmem>>, %arg6: memref<1x8xf32, #tpu.memory_space<vmem>>, %arg7: memref<2x8xf32, #tpu.memory_space<vmem>>) attributes {dimension_semantics = [#tpu.dimension_semantics<parallel>], iteration_bounds = array<i64: 1>, scalar_prefetch = 0 : i64, scratch_operands = 0 : i64, tpu.core_type = #tpu.core_type<tc>, window_params = [{transform_indices = @transform_0, window_bounds = array<i64: 2, 8, 32>}, {pipeline_mode = #tpu.pipeline_mode<synchronous>, transform_indices = @transform_1, window_bounds = array<i64: 32, 128>}, {pipeline_mode = #tpu.pipeline_mode<synchronous>, transform_indices = @transform_2, window_bounds = array<i64: 32, 32>}, {pipeline_mode = #tpu.pipeline_mode<synchronous>, transform_indices = @transform_3, window_bounds = array<i64: 1, 32>}, {pipeline_mode = #tpu.pipeline_mode<synchronous>, transform_indices = @transform_4, window_bounds = array<i64: 32, 8>}, {pipeline_mode = #tpu.pipeline_mode<synchronous>, transform_indices = @transform_5, window_bounds = array<i64: 1, 8>}, {transform_indices = @transform_6, window_bounds = array<i64: 2, 8>}]} {
    %c0 = arith.constant 0 : index
    %c0_0 = arith.constant 0 : index
    %c0_1 = arith.constant 0 : index
    %0 = vector.load %arg1[%c0, %c0_0, %c0_1] : memref<2x8x32xf32, #tpu.memory_space<vmem>>, vector<2x8x32xf32>
    %1 = vector.shape_cast %0 : vector<2x8x32xf32> to vector<16x32xf32>
    %c0_2 = arith.constant 0 : index
    %c0_3 = arith.constant 0 : index
    %2 = vector.load %arg2[%c0_2, %c0_3] : memref<32x128xf32, #tpu.memory_space<vmem>>, vector<32x128xf32>
    %cst = arith.constant dense<0.000000e+00> : vector<16x128xf32>
    %3 = tpu.matmul %1, %2, %cst {dimension_numbers = #tpu.dot_dimension_numbers<[1], [0], [0], [1], [0, 0, 1, 1], [], []>} : vector<16x32xf32>, vector<32x128xf32>, vector<16x128xf32> -> vector<16x128xf32>
    %cst_4 = arith.constant 0.000000e+00 : f32
    %4 = vector.broadcast %cst_4 : f32 to vector<16x128xf32>
    %5 = arith.maximumf %3, %4 : vector<16x128xf32>
    %c32_i32 = arith.constant 32 : i32
    %6 = tpu.dynamic_rotate %5 by %c32_i32 dim 1 : vector<16x128xf32>, i32 -> vector<16x128xf32>
    %7 = arith.maximumf %5, %6 : vector<16x128xf32>
    %c64_i32 = arith.constant 64 : i32
    %8 = tpu.dynamic_rotate %7 by %c64_i32 dim 1 : vector<16x128xf32>, i32 -> vector<16x128xf32>
    %9 = arith.maximumf %7, %8 : vector<16x128xf32>
    %10 = vector.extract_strided_slice %9 {offsets = [0, 0], sizes = [16, 32], strides = [1, 1]} : vector<16x128xf32> to vector<16x32xf32>
    %11 = vector.shape_cast %10 : vector<16x32xf32> to vector<2x8x32xf32>
    %cst_5 = arith.constant dense<0.000000e+00> : vector<2x32xf32>
    %12 = vector.multi_reduction <add>, %11, %cst_5 [1] : vector<2x8x32xf32> to vector<2x32xf32>
    %c0_6 = arith.constant 0 : index
    %c0_7 = arith.constant 0 : index
    %13 = vector.load %arg3[%c0_6, %c0_7] : memref<32x32xf32, #tpu.memory_space<vmem>>, vector<32x32xf32>
    %cst_8 = arith.constant dense<0.000000e+00> : vector<2x32xf32>
    %14 = tpu.matmul %12, %13, %cst_8 {dimension_numbers = #tpu.dot_dimension_numbers<[1], [0], [0], [1], [0, 0, 1, 1], [], []>} : vector<2x32xf32>, vector<32x32xf32>, vector<2x32xf32> -> vector<2x32xf32>
    %c0_9 = arith.constant 0 : index
    %c0_10 = arith.constant 0 : index
    %15 = vector.load %arg4[%c0_9, %c0_10] : memref<1x32xf32, #tpu.memory_space<vmem>>, vector<1x32xf32>
    %16 = vector.broadcast %15 : vector<1x32xf32> to vector<2x32xf32>
    %17 = arith.addf %14, %16 : vector<2x32xf32>
    %cst_11 = arith.constant 0.000000e+00 : f32
    %18 = vector.broadcast %cst_11 : f32 to vector<2x32xf32>
    %19 = arith.maximumf %17, %18 : vector<2x32xf32>
    %c0_12 = arith.constant 0 : index
    %c0_13 = arith.constant 0 : index
    %20 = vector.load %arg5[%c0_12, %c0_13] : memref<32x8xf32, #tpu.memory_space<vmem>>, vector<32x8xf32>
    %cst_14 = arith.constant dense<0.000000e+00> : vector<2x8xf32>
    %21 = tpu.matmul %19, %20, %cst_14 {dimension_numbers = #tpu.dot_dimension_numbers<[1], [0], [0], [1], [0, 0, 1, 1], [], []>} : vector<2x32xf32>, vector<32x8xf32>, vector<2x8xf32> -> vector<2x8xf32>
    %c0_15 = arith.constant 0 : index
    %c0_16 = arith.constant 0 : index
    %22 = vector.load %arg6[%c0_15, %c0_16] : memref<1x8xf32, #tpu.memory_space<vmem>>, vector<1x8xf32>
    %23 = vector.broadcast %22 : vector<1x8xf32> to vector<2x8xf32>
    %24 = arith.addf %21, %23 : vector<2x8xf32>
    %cst_17 = arith.constant dense<0xFF800000> : vector<2xf32>
    %25 = vector.multi_reduction <maximumf>, %24, %cst_17 [1] : vector<2x8xf32> to vector<2xf32>
    %26 = vector.shape_cast %25 : vector<2xf32> to vector<2x1xf32>
    %27 = vector.broadcast %26 : vector<2x1xf32> to vector<2x8xf32>
    %28 = arith.subf %24, %27 : vector<2x8xf32>
    %29 = math.exp %28 : vector<2x8xf32>
    %cst_18 = arith.constant dense<0.000000e+00> : vector<2xf32>
    %30 = vector.multi_reduction <add>, %29, %cst_18 [1] : vector<2x8xf32> to vector<2xf32>
    %31 = vector.shape_cast %30 : vector<2xf32> to vector<2x1xf32>
    %32 = math.log %31 : vector<2x1xf32>
    %33 = vector.broadcast %32 : vector<2x1xf32> to vector<2x8xf32>
    %34 = arith.subf %28, %33 : vector<2x8xf32>
    %c0_19 = arith.constant 0 : index
    %c0_20 = arith.constant 0 : index
    %35 = vector.load %arg7[%c0_19, %c0_20] : memref<2x8xf32, #tpu.memory_space<vmem>>, vector<2x8xf32>
    tpu.vector_store %arg7[%c0_19, %c0_20], %34 {strides = array<i32>} : memref<2x8xf32, #tpu.memory_space<vmem>>, vector<2x8xf32>,
    return
  }
  func.func @transform_0(%arg0: i32) -> (i32, i32, i32) {
    %c0_i32 = arith.constant 0 : i32
    %c0_i32_0 = arith.constant 0 : i32
    %c0_i32_1 = arith.constant 0 : i32
    return %arg0, %c0_i32, %c0_i32_0 : i32, i32, i32
  }
  func.func @transform_1(%arg0: i32) -> (i32, i32) {
    %c0_i32 = arith.constant 0 : i32
    %c0_i32_0 = arith.constant 0 : i32
    %c0_i32_1 = arith.constant 0 : i32
    return %c0_i32, %c0_i32_0 : i32, i32
  }
  func.func @transform_2(%arg0: i32) -> (i32, i32) {
    %c0_i32 = arith.constant 0 : i32
    %c0_i32_0 = arith.constant 0 : i32
    %c0_i32_1 = arith.constant 0 : i32
    return %c0_i32, %c0_i32_0 : i32, i32
  }
  func.func @transform_3(%arg0: i32) -> (i32, i32) {
    %c0_i32 = arith.constant 0 : i32
    %c0_i32_0 = arith.constant 0 : i32
    %c0_i32_1 = arith.constant 0 : i32
    return %c0_i32, %c0_i32_0 : i32, i32
  }
  func.func @transform_4(%arg0: i32) -> (i32, i32) {
    %c0_i32 = arith.constant 0 : i32
    %c0_i32_0 = arith.constant 0 : i32
    %c0_i32_1 = arith.constant 0 : i32
    return %c0_i32, %c0_i32_0 : i32, i32
  }
  func.func @transform_5(%arg0: i32) -> (i32, i32) {
    %c0_i32 = arith.constant 0 : i32
    %c0_i32_0 = arith.constant 0 : i32
    %c0_i32_1 = arith.constant 0 : i32
    return %c0_i32, %c0_i32_0 : i32, i32
  }
  func.func @transform_6(%arg0: i32) -> (i32, i32) {
    %c0_i32 = arith.constant 0 : i32
    %c0_i32_0 = arith.constant 0 : i32
    return %arg0, %c0_i32 : i32, i32
  }
}

</mosaic_0001>

<bundles_post_ra>
// kernel: tpu_custom_call.1
= control target key start
LH: loop header
LB: loop body
LE: loop exit
PB: predicated region body
PF: predicated region fallthrough
CT: control target
= control target key end

     0   :  { %11 = vsyncpa [#allocation3], 0  ;;  %s407_s0 = inlined_call_operand.hbm [shape: f32[2,8,32], index: 0, kind: input, shape index: {}]   ;;  %s408_s1 = inlined_call_operand.vmem [shape: f32[32,128], index: 1, kind: input, shape index: {}]   ;;  %s409_s2 = inlined_call_operand.hbm [shape: f32[32,32], index: 2, kind: input, shape index: {}]   ;;  %s410_s3 = inlined_call_operand.vmem [shape: f32[1,32], index: 3, kind: input, shape index: {}]   ;;  %s411_s4 = inlined_call_operand.vmem [shape: f32[32,8], index: 4, kind: input, shape index: {}]   ;;  %s412_s5 = inlined_call_operand.vmem [shape: f32[1,8], index: 5, kind: input, shape index: {}]   ;;  %s413_s6 = inlined_call_operand.hbm [shape: f32[2,8], index: 6, kind: output, shape index: {}]  }
   0x1   :  { %12 = vsyncpa [#allocation6], 0 }
   0x2   :  { %13 = vsyncpa [#allocation4], 0  ;;  %s18_s23 = sshll.u32 %s407_s0, 4  ;;  %s317_s24 = smov [#allocation2]   ;;  %s19_s23 = int_to_ptr.hbm [resolvable:$true] %s18_s23 }
   0x3   :  { %s20_s25 = sshll.u32 %s317_s24, 4  ;;  %s33_s28 = sshll.u32 %s409_s2, 4  ;;  %s21_s25 = int_to_ptr.vmem [resolvable:$true] %s20_s25  ;;  %s34_s28 = int_to_ptr.hbm [resolvable:$true] %s33_s28 }
   0x4   :  { %s318_s29 = smov 128   ;;  %s319_s30 = smov 8  }
   0x5   :  { %26 = dma.hbm_to_vmem [thread:$0]  %s19_s23, 256, %s21_s25, [#allocation3], %s318_s29, %s318_s29, %s319_s30  }
   0x6   :  { %s320_s7 = smov [#allocation5]  }
   0x7   :  { %s35_s8 = sshll.u32 %s320_s7, 4  ;;  %s36_s8 = int_to_ptr.vmem [resolvable:$true] %s35_s8 }
   0x8   :  { %41 = dma.hbm_to_vmem [thread:$0]  %s34_s28, 512, %s36_s8, [#allocation6], %s318_s29, %s318_s29, %s319_s30  }
   0x9   :  { %311 = dma.done.wait [#allocation3], 256  }
   0xa   :  { %312 = vsyncadd [#allocation3], 4294967040 }
   0xb   :  { %313 = dma.done.wait [#allocation6], 512  }
   0xc   :  { %314 = vsyncadd [#allocation6], 4294966784  ;;  %v61_v0 = vld [vmem:[%s408_s1 + $0x18] sm:$0xff]  ;;  %v60_v1 = vld [vmem:[%s408_s1 + $0x10] sm:$0xff]  ;;  %vm62_vm0 = vcmask 261120   ;;  %s321_s15 = smov 32  }
   0xd   :  { %81 = vmatpush.msra.mxu0 %v61_v0  ;;  %222 = vmatpush.msra.mxu3 %v61_v0  ;;  %v59_v2 = vld [vmem:[%s408_s1 + $0x8] sm:$0xff]  ;;  %v58_v3 = vld [vmem:[%s408_s1] sm:$0xff]  ;;  %s322_s1 = smov 64   ;;  %v121_v16 = vld [vmem:[#allocation5 + $0x8] sm:$0xff]  ;;  %vm130_vm1 = vcmask 1041409   ;;  %vm186_vm2 = vcmask 58368  }
   0xe   :  { %v56_v4 = vld [vmem:[#allocation2] sm:$0xff]  ;;  %v57_v5 = vld [vmem:[#allocation2 + $0x8] sm:$0xff]  ;;  %v120_v17 = vld [vmem:[#allocation5] sm:$0xff]  ;;  %s207_s29 = sshll.u32 %s413_s6, 4  ;;  %s208_s29 = int_to_ptr.hbm [resolvable:$true] %s207_s29 }
   0xf   :  { %82 = vmatpush.msra.mxu0 %v60_v1  ;;  %223 = vmatpush.msra.mxu3 %v60_v1  ;;  %v123_v14 = vld [vmem:[#allocation5 + $0x18] sm:$0xff]  ;;  %v122_v15 = vld [vmem:[#allocation5 + $0x10] sm:$0xff]  ;;  %v158_v18 = vld [vmem:[%s411_s4 + $0x18] sm:$0xff] }
  0x10   :  { %146 = vmatpush.msra.mxu1 %v123_v14  ;;  %178 = vmatpush.msra.mxu2 %v158_v18  ;;  %v157_v38 = vld [vmem:[%s411_s4 + $0x10] sm:$0xff]  ;;  %v156_v39 = vld [vmem:[%s411_s4 + $0x8] sm:$0xff]  ;;  %v155_v40 = vld [vmem:[%s411_s4] sm:$0xff] }
  0x11   :  { %83 = vmatpush.msra.mxu0 %v59_v2  ;;  %224 = vmatpush.msra.mxu3 %v59_v2  ;;  %v233_v41 = vld [vmem:[%s410_s3] ss:$0 sm:$0xff]  ;;  %s323_s3 = smov [#allocation7]  }
  0x12   :  { %147 = vmatpush.msra.mxu1 %v122_v15  ;;  %179 = vmatpush.msra.mxu2 %v157_v38  ;;  %v234_v45 = vld [vmem:[%s412_s5] ss:$0 sm:$0xff]  ;;  %s205_s4 = sshll.u32 %s323_s3, 4  ;;  %s206_s4 = int_to_ptr.vmem [resolvable:$true] %s205_s4 }
  0x13   :  { %84 = vmatpush.msra.mxu0 %v58_v3  ;;  %225 = vmatpush.msra.mxu3 %v58_v3 }
  0x14   :  { %218 = vmatmul.msk.f32.vlgmr.msra.gmra.mxu0 %vm62_vm0, %v56_v4  ;;  %219 = vmatmul.msk.f32.vlgmr.msra.gmra.mxu3 %vm62_vm0, %v57_v5 }
  0x15   :  { %148 = vmatpush.msra.mxu1 %v121_v16  ;;  %180 = vmatpush.msra.mxu2 %v156_v39 }
  0x17   :  { %149 = vmatpush.msra.mxu1 %v120_v17  ;;  %181 = vmatpush.msra.mxu2 %v155_v40 }
  0x91   :  { %v86_v6 = vpop.f32.mrf.mxu0 }
  0x92   :  { %v92_v7 = vmax.f32 %v86_v6, 0.0 }
  0x94   :  { %94 = vrot.lane.b32.xlu0 %v92_v7, %s321_s15 }
  0x97   :  { %v89_v8 = vpop.f32.mrf.mxu3 }
  0x98   :  { %v93_v9 = vmax.f32 %v89_v8, 0.0 }
  0x9c   :  { %96 = vrot.lane.b32.xlu0 %v93_v9, %s321_s15 }
 0x106   :  { %v95_v10 = vpop.permute.xlu0 %94 }
 0x107   :  { %v98_v11 = vmax.f32 %v92_v7, %v95_v10 }
 0x109   :  { %100 = vrot.lane.b32.xlu1 %v98_v11, %s322_s1 }
 0x10e   :  { %v97_v12 = vpop.permute.xlu0 %96 }
 0x10f   :  { %v99_v13 = vmax.f32 %v93_v9, %v97_v12 }
 0x111   :  { %102 = vrot.lane.b32.xlu1 %v99_v13, %s322_s1 }
 0x17b   :  { %v101_v19 = vpop.permute.xlu1 %100 }
 0x17c   :  { %v104_v20 = vmax.f32 %v98_v11, %v101_v19 }
 0x17e   :  { %v106_v21 = vsel %vm62_vm0, %v104_v20, 0.0 }
 0x17f   :  { %v107_v22 = vrot.slane %v106_v21, 4 }
 0x181   :  { %v108_v23 = vadd.f32 %v107_v22, %v106_v21 }
 0x183   :  { %v103_v24 = vpop.permute.xlu1 %102  ;;  %v109_v26 = vrot.slane %v108_v23, 2 }
 0x184   :  { %v105_v25 = vmax.f32 %v99_v13, %v103_v24 }
 0x185   :  { %v110_v29 = vadd.f32 %v109_v26, %v108_v23 }
 0x186   :  { %v113_v27 = vsel %vm62_vm0, %v105_v25, 0.0 }
 0x187   :  { %v114_v28 = vrot.slane %v113_v27, 4  ;;  %v111_v32 = vrot.slane %v110_v29, 1 }
 0x189   :  { %v115_v30 = vadd.f32 %v114_v28, %v113_v27  ;;  %v112_v35 = vadd.f32 %v111_v32, %v110_v29 }
 0x18b   :  { %v116_v31 = vrot.slane %v115_v30, 2 }
 0x18d   :  { %v117_v33 = vadd.f32 %v116_v31, %v115_v30 }
 0x18f   :  { %v118_v34 = vrot.slane %v117_v33, 1 }
 0x191   :  { %v119_v36 = vadd.f32 %v118_v34, %v117_v33 }
 0x193   :  { %v131_v37 = vsel %vm130_vm1, %v119_v36, %v112_v35 }
 0x194   :  { %220 = vmatmul.msk.f32.vlgmr.msra.gmra.mxu1 %vm62_vm0, %v131_v37 }
 0x211   :  { %v151_v42 = vpop.f32.mrf.mxu1 }
 0x212   :  { %v152_v43 = vadd.f32 %v233_v41, %v151_v42 }
 0x214   :  { %v154_v44 = vmax.f32 %v152_v43, 0.0 }
 0x216   :  { %221 = vmatmul.msk.f32.vlgmr.msra.gmra.mxu2 %vm62_vm0, %v154_v44 }
 0x299   :  { %v183_v46 = vpop.f32.mrf.mxu2 }
 0x29a   :  { %v184_v47 = vadd.f32 %v234_v45, %v183_v46 }
 0x29c   :  { %v187_v48 = vsel %vm186_vm2, %v184_v47, -inf }
 0x29d   :  { %188 = vmax.xlane.f32.xlu2 %v187_v48 }
 0x310   :  { %v189_v49 = vpop.xlane.xlu2 %188 }
 0x311   :  { %v190_v50 = vsub.f32 %v184_v47, %v189_v49 }
 0x313   :  { %v191_v51 = vmul.f32 1.442695, %v190_v50 }
 0x315   :  { %235 = vpow2.f32 %v191_v51 }
 0x31b   :  { %v236_v52 = vpop.eup %235 }
 0x31c   :  { %v193_v53 = vsel %vm186_vm2, %v236_v52, 0.0 }
 0x31d   :  { %194 = vadd.xlane.f32.xlu2 %v193_v53 }
 0x390   :  { %v195_v54 = vpop.xlane.xlu2 %194 }
 0x391   :  { %237 = vlog2.f32 %v195_v54 }
 0x397   :  { %v238_v55 = vpop.eup %237 }
 0x398   :  { %v197_v56 = vmul.f32 0.6931472, %v238_v55 }
 0x39a   :  { %v198_v57 = vsub.f32 %v190_v50, %v197_v56 }
 0x39c   :  { %199 = vst.msk [vmem:[#allocation7] sm:$0x3] %vm186_vm2, %v198_v57 }
 0x39d   :  { %210 = dma.vmem_to_hbm [thread:$0]  %s206_s4, 32, %s208_s29, [#allocation4]  }
 0x39e   :  { %315 = dma.done.wait [#allocation4], 32  }
 0x39f   :  { %316 = vsyncadd [#allocation4], 4294967264 }
 0x3a0   :  { %215 = vsyncpa [#allocation3], 1 }
 0x3a1   :  { %216 = vsyncpa [#allocation6], 1 }
 0x3a2   :  { %217 = vsyncpa [#allocation4], 1 }

</bundles_post_ra>
